<compile_context>
chip_gen: v5e
topology: v5e:2x2
jax: 0.10.0
libtpu: 0.0.40
codegen_flags: <defaults>
</compile_context>

<pallas_src>
import functools

import jax
import jax.numpy as jnp
from jax.experimental import pallas as pl
from jax.experimental.pallas import tpu as pltpu  # noqa: F401  (kept for TPU backend import)


def _rnn_lin_kernel(t_steps, batch,
                    x2d_ref, wih_ref, whh_ref, b_ref, wlin_ref, blin_ref,
                    out_ref):
    """x2d_ref: (T*batch, I) time-major slab.  out_ref: (batch, O)."""
    # Hoist weight loads out of the recurrence (single vreg-resident copies).
    w_ih = wih_ref[...]          # (I, H)
    w_hh = whh_ref[...]          # (H, H)
    b = b_ref[...]               # (1, H) == b_ih + b_hh

    # One fused input projection for ALL timesteps (off the h-critical-path):
    #   (T*batch, I) @ (I, H) + b  ->  (T*batch, H)
    xp_slab = jnp.dot(x2d_ref[...], w_ih,
                      preferred_element_type=jnp.float32) + b

    # Recurrence, fully unrolled (T small & static).  h stays a value (vregs).
    # h0 = 0  =>  h1 = tanh(x0 @ W_ih + b).  Each step reads a contiguous,
    # sublane-aligned (batch, H) slice of the precomputed slab.
    h = jnp.tanh(xp_slab[0:batch, :])
    for t in range(1, t_steps):
        xp_t = xp_slab[t * batch:(t + 1) * batch, :]
        h = jnp.tanh(xp_t + jnp.dot(h, w_hh,
                                    preferred_element_type=jnp.float32))

    # Linear head fused onto the last hidden state (== rnn_out[:, -1, :]).
    out_ref[...] = (
        jnp.dot(h, wlin_ref[...], preferred_element_type=jnp.float32)
        + blin_ref[...]
    ).astype(out_ref.dtype)


def baseline_rnn_forward(x, w_ih, w_hh, b, w_lin, b_lin):
    """x: (B, T, I) float32.  Weights pre-transposed to (in, out) layout.

    Returns (B, output_size) float32, matching baselineRNN.forward.
    """
    B, T, I = x.shape
    H = w_ih.shape[1]
    O = w_lin.shape[1]

    # Pad batch up to a full sublane group (8 rows); padding rows cost nothing
    # (the vreg / MXU row group is occupied either way) and are dropped below.
    B_pad = max(8, ((B + 7) // 8) * 8)
    x_tm = jnp.transpose(x, (1, 0, 2))                    # (T, B, I) time-major
    if B_pad != B:
        x_tm = jnp.pad(x_tm, ((0, 0), (0, B_pad - B), (0, 0)))
    x2d = x_tm.reshape(T * B_pad, I)                      # (T*B_pad, I) slab

    kernel = functools.partial(_rnn_lin_kernel, T, B_pad)

    out_pad = pl.pallas_call(
        kernel,
        out_shape=jax.ShapeDtypeStruct((B_pad, O), jnp.float32),
    )(x2d, w_ih, w_hh, b, w_lin, b_lin)

    return out_pad[:B]


def baseline_rnn_reference(x, w_ih, w_hh, b, w_lin, b_lin):
    """Pure-JAX reference (lax.scan) matching torch.nn.RNN(tanh) + Linear."""
    B, T, I = x.shape
    H = w_ih.shape[1]

    def step(h, x_t):
        h_new = jnp.tanh(x_t @ w_ih + h @ w_hh + b)
        return h_new, None

    h0 = jnp.zeros((B, H), jnp.float32)
    h_T, _ = jax.lax.scan(step, h0, jnp.transpose(x, (1, 0, 2)))
    return h_T @ w_lin + b_lin


if __name__ == "__main__":
    # Shapes consistent with the module's forward:
    # batch=2, seq=8, input_size=16, hidden_size=32, output_size=1.
    B, T, I, H, O = 2, 8, 16, 32, 1

    key = jax.random.PRNGKey(0)
    kx, k1, k2, k3, k4, k5, k6 = jax.random.split(key, 7)

    # Deterministic parameter init mimicking PyTorch's U(-1/sqrt(H), 1/sqrt(H)).
    s = 1.0 / jnp.sqrt(jnp.float32(H))
    w_ih = jax.random.uniform(k1, (I, H), jnp.float32, -s, s)   # = W_ih^T
    w_hh = jax.random.uniform(k2, (H, H), jnp.float32, -s, s)   # = W_hh^T
    b_ih = jax.random.uniform(k3, (1, H), jnp.float32, -s, s)
    b_hh = jax.random.uniform(k4, (1, H), jnp.float32, -s, s)
    b = b_ih + b_hh
    w_lin = jax.random.uniform(k5, (H, O), jnp.float32, -s, s)  # = W_lin^T
    b_lin = jax.random.uniform(k6, (1, O), jnp.float32, -s, s)

    x = jax.random.normal(kx, (B, T, I), jnp.float32)

    out = baseline_rnn_forward(x, w_ih, w_hh, b, w_lin, b_lin)
    out = jax.block_until_ready(out)

    ref = baseline_rnn_reference(x, w_ih, w_hh, b, w_lin, b_lin)
    assert out.shape == (B, O)
    assert jnp.allclose(out, ref, atol=1e-5, rtol=1e-5), (out, ref)

    print("KERNEL_OK")
</pallas_src>

<mosaic_0001>
module attributes {stable_mosaic.version = 11 : i64} {
  func.func @_rnn_lin_kernel(%arg0: memref<64x16xf32, #tpu.memory_space<vmem>>, %arg1: memref<16x32xf32, #tpu.memory_space<vmem>>, %arg2: memref<32x32xf32, #tpu.memory_space<vmem>>, %arg3: memref<1x32xf32, #tpu.memory_space<vmem>>, %arg4: memref<32x1xf32, #tpu.memory_space<vmem>>, %arg5: memref<1x1xf32, #tpu.memory_space<vmem>>, %arg6: memref<8x1xf32, #tpu.memory_space<vmem>>) attributes {dimension_semantics = [], scalar_prefetch = 0 : i64, scratch_operands = 0 : i64, tpu.core_type = #tpu.core_type<tc>} {
    %c0 = arith.constant 0 : index
    %c0_0 = arith.constant 0 : index
    %0 = vector.load %arg1[%c0, %c0_0] : memref<16x32xf32, #tpu.memory_space<vmem>>, vector<16x32xf32>
    %c0_1 = arith.constant 0 : index
    %c0_2 = arith.constant 0 : index
    %1 = vector.load %arg2[%c0_1, %c0_2] : memref<32x32xf32, #tpu.memory_space<vmem>>, vector<32x32xf32>
    %c0_3 = arith.constant 0 : index
    %c0_4 = arith.constant 0 : index
    %2 = vector.load %arg3[%c0_3, %c0_4] : memref<1x32xf32, #tpu.memory_space<vmem>>, vector<1x32xf32>
    %c0_5 = arith.constant 0 : index
    %c0_6 = arith.constant 0 : index
    %3 = vector.load %arg0[%c0_5, %c0_6] : memref<64x16xf32, #tpu.memory_space<vmem>>, vector<64x16xf32>
    %cst = arith.constant dense<0.000000e+00> : vector<64x32xf32>
    %4 = tpu.matmul %3, %0, %cst {dimension_numbers = #tpu.dot_dimension_numbers<[1], [0], [0], [1], [0, 0, 1, 1], [], []>} : vector<64x16xf32>, vector<16x32xf32>, vector<64x32xf32> -> vector<64x32xf32>
    %5 = vector.broadcast %2 : vector<1x32xf32> to vector<64x32xf32>
    %6 = arith.addf %4, %5 : vector<64x32xf32>
    %7 = vector.extract_strided_slice %6 {offsets = [0, 0], sizes = [8, 32], strides = [1, 1]} : vector<64x32xf32> to vector<8x32xf32>
    %8 = math.tanh %7 : vector<8x32xf32>
    %9 = vector.extract_strided_slice %6 {offsets = [8, 0], sizes = [8, 32], strides = [1, 1]} : vector<64x32xf32> to vector<8x32xf32>
    %cst_7 = arith.constant dense<0.000000e+00> : vector<8x32xf32>
    %10 = tpu.matmul %8, %1, %cst_7 {dimension_numbers = #tpu.dot_dimension_numbers<[1], [0], [0], [1], [0, 0, 1, 1], [], []>} : vector<8x32xf32>, vector<32x32xf32>, vector<8x32xf32> -> vector<8x32xf32>
    %11 = arith.addf %9, %10 : vector<8x32xf32>
    %12 = math.tanh %11 : vector<8x32xf32>
    %13 = vector.extract_strided_slice %6 {offsets = [16, 0], sizes = [8, 32], strides = [1, 1]} : vector<64x32xf32> to vector<8x32xf32>
    %cst_8 = arith.constant dense<0.000000e+00> : vector<8x32xf32>
    %14 = tpu.matmul %12, %1, %cst_8 {dimension_numbers = #tpu.dot_dimension_numbers<[1], [0], [0], [1], [0, 0, 1, 1], [], []>} : vector<8x32xf32>, vector<32x32xf32>, vector<8x32xf32> -> vector<8x32xf32>
    %15 = arith.addf %13, %14 : vector<8x32xf32>
    %16 = math.tanh %15 : vector<8x32xf32>
    %17 = vector.extract_strided_slice %6 {offsets = [24, 0], sizes = [8, 32], strides = [1, 1]} : vector<64x32xf32> to vector<8x32xf32>
    %cst_9 = arith.constant dense<0.000000e+00> : vector<8x32xf32>
    %18 = tpu.matmul %16, %1, %cst_9 {dimension_numbers = #tpu.dot_dimension_numbers<[1], [0], [0], [1], [0, 0, 1, 1], [], []>} : vector<8x32xf32>, vector<32x32xf32>, vector<8x32xf32> -> vector<8x32xf32>
    %19 = arith.addf %17, %18 : vector<8x32xf32>
    %20 = math.tanh %19 : vector<8x32xf32>
    %21 = vector.extract_strided_slice %6 {offsets = [32, 0], sizes = [8, 32], strides = [1, 1]} : vector<64x32xf32> to vector<8x32xf32>
    %cst_10 = arith.constant dense<0.000000e+00> : vector<8x32xf32>
    %22 = tpu.matmul %20, %1, %cst_10 {dimension_numbers = #tpu.dot_dimension_numbers<[1], [0], [0], [1], [0, 0, 1, 1], [], []>} : vector<8x32xf32>, vector<32x32xf32>, vector<8x32xf32> -> vector<8x32xf32>
    %23 = arith.addf %21, %22 : vector<8x32xf32>
    %24 = math.tanh %23 : vector<8x32xf32>
    %25 = vector.extract_strided_slice %6 {offsets = [40, 0], sizes = [8, 32], strides = [1, 1]} : vector<64x32xf32> to vector<8x32xf32>
    %cst_11 = arith.constant dense<0.000000e+00> : vector<8x32xf32>
    %26 = tpu.matmul %24, %1, %cst_11 {dimension_numbers = #tpu.dot_dimension_numbers<[1], [0], [0], [1], [0, 0, 1, 1], [], []>} : vector<8x32xf32>, vector<32x32xf32>, vector<8x32xf32> -> vector<8x32xf32>
    %27 = arith.addf %25, %26 : vector<8x32xf32>
    %28 = math.tanh %27 : vector<8x32xf32>
    %29 = vector.extract_strided_slice %6 {offsets = [48, 0], sizes = [8, 32], strides = [1, 1]} : vector<64x32xf32> to vector<8x32xf32>
    %cst_12 = arith.constant dense<0.000000e+00> : vector<8x32xf32>
    %30 = tpu.matmul %28, %1, %cst_12 {dimension_numbers = #tpu.dot_dimension_numbers<[1], [0], [0], [1], [0, 0, 1, 1], [], []>} : vector<8x32xf32>, vector<32x32xf32>, vector<8x32xf32> -> vector<8x32xf32>
    %31 = arith.addf %29, %30 : vector<8x32xf32>
    %32 = math.tanh %31 : vector<8x32xf32>
    %33 = vector.extract_strided_slice %6 {offsets = [56, 0], sizes = [8, 32], strides = [1, 1]} : vector<64x32xf32> to vector<8x32xf32>
    %cst_13 = arith.constant dense<0.000000e+00> : vector<8x32xf32>
    %34 = tpu.matmul %32, %1, %cst_13 {dimension_numbers = #tpu.dot_dimension_numbers<[1], [0], [0], [1], [0, 0, 1, 1], [], []>} : vector<8x32xf32>, vector<32x32xf32>, vector<8x32xf32> -> vector<8x32xf32>
    %35 = arith.addf %33, %34 : vector<8x32xf32>
    %36 = math.tanh %35 : vector<8x32xf32>
    %c0_14 = arith.constant 0 : index
    %c0_15 = arith.constant 0 : index
    %37 = vector.load %arg4[%c0_14, %c0_15] : memref<32x1xf32, #tpu.memory_space<vmem>>, vector<32x1xf32>
    %cst_16 = arith.constant dense<0.000000e+00> : vector<8x1xf32>
    %38 = tpu.matmul %36, %37, %cst_16 {dimension_numbers = #tpu.dot_dimension_numbers<[1], [0], [0], [1], [0, 0, 1, 1], [], []>} : vector<8x32xf32>, vector<32x1xf32>, vector<8x1xf32> -> vector<8x1xf32>
    %c0_17 = arith.constant 0 : index
    %c0_18 = arith.constant 0 : index
    %39 = vector.load %arg5[%c0_17, %c0_18] : memref<1x1xf32, #tpu.memory_space<vmem>>, vector<1x1xf32>
    %40 = vector.broadcast %39 : vector<1x1xf32> to vector<8x1xf32>
    %41 = arith.addf %38, %40 : vector<8x1xf32>
    %c0_19 = arith.constant 0 : index
    %c0_20 = arith.constant 0 : index
    %42 = vector.load %arg6[%c0_19, %c0_20] : memref<8x1xf32, #tpu.memory_space<vmem>>, vector<8x1xf32>
    tpu.vector_store %arg6[%c0_19, %c0_20], %41 {strides = array<i32>} : memref<8x1xf32, #tpu.memory_space<vmem>>, vector<8x1xf32>,
    return
  }
}

</mosaic_0001>

<bundles_post_ra>
// kernel: tpu_custom_call.1
= control target key start
LH: loop header
LB: loop body
LE: loop exit
PB: predicated region body
PF: predicated region fallthrough
CT: control target
= control target key end

     0   :  { %vm43_vm0 = vcmask 130048   ;;  %vm110_vm1 = vcmask 261120   ;;  %vm317_vm2 = vcmask 7168   ;;  %s483_s1 = inlined_call_operand.vmem [shape: f32[16,32], index: 1, kind: input, shape index: {}]   ;;  %s484_s0 = inlined_call_operand.vmem [shape: f32[64,16], index: 0, kind: input, shape index: {}]   ;;  %s485_s3 = inlined_call_operand.vmem [shape: f32[1,32], index: 3, kind: input, shape index: {}]   ;;  %s486_s2 = inlined_call_operand.vmem [shape: f32[32,32], index: 2, kind: input, shape index: {}]   ;;  %s487_s4 = inlined_call_operand.vmem [shape: f32[32,1], index: 4, kind: input, shape index: {}]   ;;  %s488_s5 = inlined_call_operand.<no memory space> [shape: f32[1,1], index: 5, kind: input, shape index: {}]   ;;  %s489_s6 = inlined_call_operand.vmem [shape: f32[8,1], index: 6, kind: output, shape index: {}]  }
   0x1   :  { %v26_v0 = vld [vmem:[%s483_s1 + $0x8] sm:$0xff]  ;;  %v25_v1 = vld [vmem:[%s483_s1] sm:$0xff]  ;;  %v30_v3 = vld [vmem:[%s486_s2 + $0x18] sm:$0xff]  ;;  %v11_v53 = vstv %s488_s5 }
   0x2   :  { %82 = vmatpush.msra.mxu0 %v26_v0  ;;  %v32_v2 = vld [vmem:[%s484_s0] sm:$0xff]  ;;  %339 = vmatpush.msra.mxu3 %v26_v0  ;;  %v29_v4 = vld [vmem:[%s486_s2 + $0x10] sm:$0xff]  ;;  %v33_v5 = vld [vmem:[%s484_s0 + $0x8] sm:$0xff]  ;;  %12 = vst [vmem:[#allocation2] sm:$0x1] %v11_v53 }
   0x3   :  { %126 = vmatpush.msra.mxu1 %v30_v3  ;;  %151 = vmatpush.msra.mxu2 %v30_v3  ;;  %v28_v6 = vld [vmem:[%s486_s2 + $0x8] sm:$0xff]  ;;  %v27_v7 = vld [vmem:[%s486_s2] sm:$0xff]  ;;  %v34_v12 = vld [vmem:[%s484_s0 + $0x10] sm:$0xff] }
   0x4   :  { %83 = vmatpush.msra.mxu0 %v25_v1  ;;  %340 = vmatpush.msra.mxu3 %v25_v1  ;;  %v423_v8 = vld [vmem:[%s485_s3] ss:$0 sm:$0xff]  ;;  %v37_v13 = vld [vmem:[%s484_s0 + $0x28] sm:$0xff]  ;;  %v38_v14 = vld [vmem:[%s484_s0 + $0x30] sm:$0xff] }
   0x5   :  { %323 = vmatmul.msk.f32.vlgmr.msra.gmra.mxu0 %vm43_vm0, %v32_v2  ;;  %127 = vmatpush.msra.mxu1 %v29_v4  ;;  %v39_v20 = vld [vmem:[%s484_s0 + $0x38] sm:$0xff]  ;;  %v36_v28 = vld [vmem:[%s484_s0 + $0x20] sm:$0xff]  ;;  %v288_v50 = vld [vmem:[%s487_s4 + $0x10] sm:$0xff] }
   0x6   :  { %176 = vmatpush.msrb.mxu3 %v30_v3  ;;  %152 = vmatpush.msra.mxu2 %v29_v4  ;;  %v35_v21 = vld [vmem:[%s484_s0 + $0x18] sm:$0xff]  ;;  %v287_v51 = vld [vmem:[%s487_s4 + $0x8] sm:$0xff]  ;;  %v286_v52 = vld [vmem:[%s487_s4] sm:$0xff] }
   0x7   :  { %128 = vmatpush.msra.mxu1 %v28_v6  ;;  %328 = vmatmul.msk.f32.vlgmr.msra.gmra.mxu3 %vm43_vm0, %v37_v13  ;;  %v289_v49 = vld [vmem:[%s487_s4 + $0x18] sm:$0xff] }
   0x8   :  { %177 = vmatpush.msrb.mxu3 %v29_v4  ;;  %153 = vmatpush.msra.mxu2 %v28_v6 }
   0x9   :  { %129 = vmatpush.msra.mxu1 %v27_v7  ;;  %v342_v58 = vld [vmem:[#allocation2] ss:$0 sm:$0xff] }
   0xa   :  { %178 = vmatpush.msrb.mxu3 %v28_v6  ;;  %154 = vmatpush.msra.mxu2 %v27_v7 }
   0xb   :  { %201 = vmatpush.msrb.mxu1 %v30_v3 }
   0xc   :  { %179 = vmatpush.msrb.mxu3 %v27_v7  ;;  %226 = vmatpush.msrb.mxu2 %v30_v3 }
   0xd   :  { %324 = vmatmul.msk.f32.gmra.mxu0 %vm43_vm0, %v33_v5  ;;  %202 = vmatpush.msrb.mxu1 %v29_v4 }
   0xe   :  { %227 = vmatpush.msrb.mxu2 %v29_v4  ;;  %251 = vmatpush.msra.mxu3 %v30_v3 }
   0xf   :  { %203 = vmatpush.msrb.mxu1 %v28_v6  ;;  %329 = vmatmul.msk.f32.gmra.mxu3 %vm43_vm0, %v38_v14 }
  0x10   :  { %228 = vmatpush.msrb.mxu2 %v28_v6  ;;  %252 = vmatpush.msra.mxu3 %v29_v4 }
  0x11   :  { %204 = vmatpush.msrb.mxu1 %v27_v7 }
  0x12   :  { %229 = vmatpush.msrb.mxu2 %v27_v7  ;;  %253 = vmatpush.msra.mxu3 %v28_v6 }
  0x14   :  { %254 = vmatpush.msra.mxu3 %v27_v7 }
  0x15   :  { %325 = vmatmul.msk.f32.gmra.mxu0 %vm43_vm0, %v34_v12 }
  0x17   :  { %330 = vmatmul.msk.f32.gmra.mxu3 %vm43_vm0, %v39_v20 }
  0x1d   :  { %326 = vmatmul.msk.f32.gmra.mxu0 %vm43_vm0, %v35_v21 }
  0x25   :  { %327 = vmatmul.msk.f32.gmra.mxu0 %vm43_vm0, %v36_v28 }
  0x82   :  { %v85_v9 = vpop.f32.mrf.mxu0 }
  0x83   :  { %v86_v10 = vadd.f32 %v423_v8, %v85_v9 }
  0x85   :  { %343 = vtanh.f32 %v86_v10 }
  0x8a   :  { %v88_v15 = vpop.f32.mrf.mxu0  ;;  %v100_v27 = vpop.f32.mrf.mxu3 }
  0x8b   :  { %v344_v11 = vpop.eup %343  ;;  %v89_v16 = vadd.f32 %v423_v8, %v88_v15  ;;  %v101_v41 = vadd.f32 %v423_v8, %v100_v27 }
  0x8c   :  { %331 = vmatmul.msk.f32.vlgmr.msra.gmra.mxu1 %vm110_vm1, %v344_v11 }
  0x8d   :  { %276 = vmatpush.msra.mxu1 %v30_v3 }
  0x8f   :  { %277 = vmatpush.msra.mxu1 %v29_v4 }
  0x91   :  { %278 = vmatpush.msra.mxu1 %v28_v6 }
  0x92   :  { %v91_v22 = vpop.f32.mrf.mxu0  ;;  %v103_v29 = vpop.f32.mrf.mxu3 }
  0x93   :  { %279 = vmatpush.msra.mxu1 %v27_v7  ;;  %v92_v23 = vadd.f32 %v423_v8, %v91_v22  ;;  %v104_v45 = vadd.f32 %v423_v8, %v103_v29 }
  0x9a   :  { %v106_v30 = vpop.f32.mrf.mxu3  ;;  %v94_v31 = vpop.f32.mrf.mxu0 }
  0x9b   :  { %v95_v32 = vadd.f32 %v423_v8, %v94_v31  ;;  %v107_v54 = vadd.f32 %v423_v8, %v106_v30 }
  0xa2   :  { %v97_v36 = vpop.f32.mrf.mxu0 }
  0xa3   :  { %v98_v37 = vadd.f32 %v423_v8, %v97_v36 }
 0x109   :  { %v131_v17 = vpop.f32.mrf.mxu1 }
 0x10a   :  { %v134_v18 = vadd.f32 %v131_v17, %v89_v16 }
 0x10c   :  { %345 = vtanh.f32 %v134_v18 }
 0x112   :  { %v346_v19 = vpop.eup %345 }
 0x113   :  { %332 = vmatmul.msk.f32.vlgmr.msra.gmra.mxu2 %vm110_vm1, %v346_v19 }
 0x114   :  { %309 = vmatpush.msra.mxu2 %v289_v49 }
 0x116   :  { %310 = vmatpush.msra.mxu2 %v288_v50 }
 0x118   :  { %311 = vmatpush.msra.mxu2 %v287_v51 }
 0x11a   :  { %312 = vmatpush.msra.mxu2 %v286_v52 }
 0x196   :  { %v156_v24 = vpop.f32.mrf.mxu2 }
 0x197   :  { %v159_v25 = vadd.f32 %v156_v24, %v92_v23 }
 0x199   :  { %347 = vtanh.f32 %v159_v25 }
 0x19f   :  { %v348_v26 = vpop.eup %347 }
 0x1a0   :  { %333 = vmatmul.msk.f32.vlgmr.msrb.gmra.mxu3 %vm110_vm1, %v348_v26 }
 0x223   :  { %v181_v33 = vpop.f32.mrf.mxu3 }
 0x224   :  { %v184_v34 = vadd.f32 %v181_v33, %v95_v32 }
 0x226   :  { %349 = vtanh.f32 %v184_v34 }
 0x22c   :  { %v350_v35 = vpop.eup %349 }
 0x22d   :  { %334 = vmatmul.msk.f32.vlgmr.msrb.gmra.mxu1 %vm110_vm1, %v350_v35 }
 0x2aa   :  { %v206_v38 = vpop.f32.mrf.mxu1 }
 0x2ab   :  { %v209_v39 = vadd.f32 %v206_v38, %v98_v37 }
 0x2ad   :  { %351 = vtanh.f32 %v209_v39 }
 0x2b3   :  { %v352_v40 = vpop.eup %351 }
 0x2b4   :  { %335 = vmatmul.msk.f32.vlgmr.msrb.gmra.mxu2 %vm110_vm1, %v352_v40 }
 0x337   :  { %v231_v42 = vpop.f32.mrf.mxu2 }
 0x338   :  { %v234_v43 = vadd.f32 %v231_v42, %v101_v41 }
 0x33a   :  { %353 = vtanh.f32 %v234_v43 }
 0x340   :  { %v354_v44 = vpop.eup %353 }
 0x341   :  { %336 = vmatmul.msk.f32.vlgmr.msra.gmra.mxu3 %vm110_vm1, %v354_v44 }
 0x3c4   :  { %v256_v46 = vpop.f32.mrf.mxu3 }
 0x3c5   :  { %v259_v47 = vadd.f32 %v256_v46, %v104_v45 }
 0x3c7   :  { %355 = vtanh.f32 %v259_v47 }
 0x3cd   :  { %v356_v48 = vpop.eup %355 }
 0x3ce   :  { %337 = vmatmul.msk.f32.vlgmr.msra.gmra.mxu1 %vm110_vm1, %v356_v48 }
 0x44b   :  { %v281_v55 = vpop.f32.mrf.mxu1 }
 0x44c   :  { %v284_v56 = vadd.f32 %v281_v55, %v107_v54 }
 0x44e   :  { %357 = vtanh.f32 %v284_v56 }
 0x454   :  { %v358_v57 = vpop.eup %357 }
 0x455   :  { %338 = vmatmul.msk.f32.vlgmr.msra.gmra.mxu2 %vm110_vm1, %v358_v57 }
 0x4d8   :  { %v314_v59 = vpop.f32.mrf.mxu2 }
 0x4d9   :  { %v315_v60 = vadd.f32 %v342_v58, %v314_v59 }
 0x4db   :  { %318 = vst.msk [vmem:[%s489_s6] sm:$0xff] %vm317_vm2, %v315_v60 }

</bundles_post_ra>
